<compile_context>
chip_gen: v7x
topology: tpu7x:2x2x1
jax: 0.10.0
libtpu: 0.0.40
codegen_flags: <defaults>
</compile_context>

<pallas_src>
import jax
import jax.numpy as jnp
from jax.experimental import pallas as pl
from jax.experimental.pallas import tpu as pltpu

H1 = 256        # fc1 output width (already a multiple of 128 lanes)
H2 = 64         # fc2 logical output width
H2_PAD = 128    # fc2 output padded to one full lane width
C = 10          # number of classes
C_PAD = 128     # classes padded to one full lane width (lane-dense output)
NEG = -1e30     # bias fill for padded class columns (exp underflows to 0)


def mlp_kernel(x_ref, w1_ref, b1_ref, w2_ref, b2_ref, w3_ref, b3_ref, o_ref):
    # x arrives f32 straight from HBM; cast to bf16 only for the MXU.
    x_bf = x_ref[...].astype(jnp.bfloat16)
    # --- fc1 + ReLU (bf16 matmul, f32 accumulation; ReLU/bias in f32) ---
    h1 = jnp.dot(x_bf, w1_ref[...], preferred_element_type=jnp.float32)
    h1 = jnp.maximum(h1 + b1_ref[...], 0.0)
    # Dropout (self.reg) is identity at inference time.
    # --- fc2 + ReLU (output padded 64 -> 128 lanes; padded cols stay 0) ---
    h2 = jnp.dot(h1.astype(jnp.bfloat16), w2_ref[...],
                 preferred_element_type=jnp.float32)
    h2 = jnp.maximum(h2 + b2_ref[...], 0.0)
    # --- fc3 (padded class columns carry bias -1e30) ---
    logits = jnp.dot(h2.astype(jnp.bfloat16), w3_ref[...],
                     preferred_element_type=jnp.float32) + b3_ref[...]
    # --- log_softmax over dim=1 (classes), numerically stable ---
    m = jnp.max(logits, axis=-1, keepdims=True)
    shifted = logits - m
    lse = jnp.log(jnp.sum(jnp.exp(shifted), axis=-1, keepdims=True))
    o_ref[...] = (shifted - lse).astype(o_ref.dtype)   # bf16 writeback


def prepare_params(params):
    """One-time weight padding / bf16 casting (hoisted out of the per-call
    forward path).  params: torch-style transposed weights, w_k (fan_in,
    fan_out), b_k (1, fan_out), all float32."""
    w1, b1 = params["w1"], params["b1"]   # (D_in, 256), (1, 256)
    w2, b2 = params["w2"], params["b2"]   # (256, 64),   (1, 64)
    w3, b3 = params["w3"], params["b3"]   # (64, 10),    (1, 10)
    w1_p = w1.astype(jnp.bfloat16)
    b1_p = b1.astype(jnp.float32)
    w2_p = jnp.zeros((H1, H2_PAD), jnp.bfloat16).at[:, :H2].set(
        w2.astype(jnp.bfloat16))
    b2_p = jnp.zeros((1, H2_PAD), jnp.float32).at[:, :H2].set(b2)
    w3_p = jnp.zeros((H2_PAD, C_PAD), jnp.bfloat16).at[:H2, :C].set(
        w3.astype(jnp.bfloat16))
    b3_p = jnp.full((1, C_PAD), NEG, jnp.float32).at[:, :C].set(b3)
    return (w1_p, b1_p, w2_p, b2_p, w3_p, b3_p)


def _round_up(v, m):
    return ((v + m - 1) // m) * m


def _pick_tile_b(B, D_in, tile_b):
    """Batch tile: multiple of 16 (bf16 output sublane packing; f32 input only
    needs 8), >= 2 grid steps when B > 16 (v7x dual-TensorCore), and a VMEM
    footprint comfortably inside v7x's 64 MiB."""
    tile_b = max(16, _round_up(min(tile_b, B), 16))
    if B > 16:
        tile_b = min(tile_b, _round_up(pl.cdiv(B, 2), 16))

    def vmem_bytes(tb):
        x_buf = 2 * tb * D_in * 4                       # double-buffered f32 x
        o_buf = 2 * tb * C_PAD * 2                      # double-buffered bf16 out
        weights = (D_in * H1 + H1 * H2_PAD + H2_PAD * C_PAD) * 2 \
            + (H1 + H2_PAD + C_PAD) * 4                 # resident weights/biases
        interm = tb * (H1 + H2_PAD + C_PAD) * 4         # f32 h1/h2/logits
        return x_buf + o_buf + weights + interm

    budget = 40 << 20
    while tile_b > 16 and vmem_bytes(tile_b) > budget:
        tile_b = max(16, _round_up(tile_b // 2, 16))
    return tile_b, vmem_bytes(tile_b)


def nn_forward(x, prepared, *, tile_b=1024):
    """x: (B, D_in) float32.  prepared: output of prepare_params()."""
    B, D_in = x.shape
    w1_p, b1_p, w2_p, b2_p, w3_p, b3_p = prepared

    tile_b, vmem_est = _pick_tile_b(B, D_in, tile_b)
    grid_b = pl.cdiv(B, tile_b)   # ragged last block masked by Pallas

    def full(arr):
        return pl.BlockSpec(arr.shape, lambda i: (0, 0))   # VMEM-resident

    out = pl.pallas_call(
        mlp_kernel,
        out_shape=jax.ShapeDtypeStruct((B, C_PAD), jnp.bfloat16),
        grid_spec=pltpu.PrefetchScalarGridSpec(
            num_scalar_prefetch=0,
            grid=(grid_b,),
            in_specs=[
                pl.BlockSpec((tile_b, D_in), lambda i: (i, 0)),  # f32 x tile
                full(w1_p), full(b1_p),
                full(w2_p), full(b2_p),
                full(w3_p), full(b3_p),
            ],
            out_specs=pl.BlockSpec((tile_b, C_PAD), lambda i: (i, 0)),
        ),
        compiler_params=pltpu.CompilerParams(
            dimension_semantics=("parallel",),
            vmem_limit_bytes=int(min(max(2 * vmem_est, 32 << 20), 48 << 20)),
        ),
    )(x.astype(jnp.float32), w1_p, b1_p, w2_p, b2_p, w3_p, b3_p)

    # Strip the 118 padded class columns; cast back to f32 for downstream use.
    return out[:, :C].astype(jnp.float32)


def nn_reference(x, params):
    """Pure-JAX f32 reference for correctness checking."""
    h1 = jnp.maximum(x @ params["w1"] + params["b1"], 0.0)
    h2 = jnp.maximum(h1 @ params["w2"] + params["b2"], 0.0)
    logits = h2 @ params["w3"] + params["b3"]
    return jax.nn.log_softmax(logits, axis=1)


def init_params(key, input_size):
    """Deterministic parameter init (shapes match the torch module)."""
    ks = jax.random.split(key, 6)

    def linear(kw, kb, fan_in, fan_out):
        bound = 1.0 / jnp.sqrt(fan_in)
        w = jax.random.uniform(kw, (fan_in, fan_out), jnp.float32, -bound, bound)
        b = jax.random.uniform(kb, (1, fan_out), jnp.float32, -bound, bound)
        return w, b

    w1, b1 = linear(ks[0], ks[1], input_size, H1)
    w2, b2 = linear(ks[2], ks[3], H1, H2)
    w3, b3 = linear(ks[4], ks[5], H2, C)
    return {"w1": w1, "b1": b1, "w2": w2, "b2": b2, "w3": w3, "b3": b3}


if __name__ == "__main__":
    key = jax.random.PRNGKey(0)
    k_x, k_p = jax.random.split(key)

    B, INPUT_SIZE = 8, 32
    x = jax.random.normal(k_x, (B, INPUT_SIZE), jnp.float32)
    params = init_params(k_p, INPUT_SIZE)
    prepared = prepare_params(params)   # one-time weight prep (serving path)

    out = nn_forward(x, prepared)
    jax.block_until_ready(out)

    assert out.shape == (B, C)
    # log_softmax rows should exponentiate-sum to 1 (bf16 output tolerance)
    row_sums = jnp.sum(jnp.exp(out), axis=1)
    assert jnp.allclose(row_sums, 1.0, atol=1e-2)
    # match the f32 reference within bf16 matmul/output tolerance
    ref = nn_reference(x, params)
    assert jnp.allclose(out, ref, atol=5e-2), float(jnp.max(jnp.abs(out - ref)))
    print("KERNEL_OK")
</pallas_src>

<mosaic_0001>
module attributes {stable_mosaic.version = 11 : i64} {
  func.func @mlp_kernel(%arg0: i32, %arg1: memref<16x32xf32, #tpu.memory_space<vmem>>, %arg2: memref<32x256xbf16, #tpu.memory_space<vmem>>, %arg3: memref<1x256xf32, #tpu.memory_space<vmem>>, %arg4: memref<256x128xbf16, #tpu.memory_space<vmem>>, %arg5: memref<1x128xf32, #tpu.memory_space<vmem>>, %arg6: memref<128x128xbf16, #tpu.memory_space<vmem>>, %arg7: memref<1x128xf32, #tpu.memory_space<vmem>>, %arg8: memref<16x128xbf16, #tpu.memory_space<vmem>>) attributes {dimension_semantics = [#tpu.dimension_semantics<parallel>], iteration_bounds = array<i64: 1>, scalar_prefetch = 0 : i64, scratch_operands = 0 : i64, tpu.core_type = #tpu.core_type<tc>, window_params = [{transform_indices = @transform_0, window_bounds = array<i64: 16, 32>}, {pipeline_mode = #tpu.pipeline_mode<synchronous>, transform_indices = @transform_1, window_bounds = array<i64: 32, 256>}, {pipeline_mode = #tpu.pipeline_mode<synchronous>, transform_indices = @transform_2, window_bounds = array<i64: 1, 256>}, {pipeline_mode = #tpu.pipeline_mode<synchronous>, transform_indices = @transform_3, window_bounds = array<i64: 256, 128>}, {pipeline_mode = #tpu.pipeline_mode<synchronous>, transform_indices = @transform_4, window_bounds = array<i64: 1, 128>}, {pipeline_mode = #tpu.pipeline_mode<synchronous>, transform_indices = @transform_5, window_bounds = array<i64: 128, 128>}, {pipeline_mode = #tpu.pipeline_mode<synchronous>, transform_indices = @transform_6, window_bounds = array<i64: 1, 128>}, {transform_indices = @transform_7, window_bounds = array<i64: 16, 128>}]} {
    %c0 = arith.constant 0 : index
    %c0_0 = arith.constant 0 : index
    %0 = vector.load %arg1[%c0, %c0_0] : memref<16x32xf32, #tpu.memory_space<vmem>>, vector<16x32xf32>
    %1 = arith.truncf %0 : vector<16x32xf32> to vector<16x32xbf16>
    %c0_1 = arith.constant 0 : index
    %c0_2 = arith.constant 0 : index
    %2 = vector.load %arg2[%c0_1, %c0_2] : memref<32x256xbf16, #tpu.memory_space<vmem>>, vector<32x256xbf16>
    %cst = arith.constant dense<0.000000e+00> : vector<16x256xf32>
    %3 = tpu.matmul %1, %2, %cst {dimension_numbers = #tpu.dot_dimension_numbers<[1], [0], [0], [1], [0, 0, 1, 1], [], []>} : vector<16x32xbf16>, vector<32x256xbf16>, vector<16x256xf32> -> vector<16x256xf32>
    %c0_3 = arith.constant 0 : index
    %c0_4 = arith.constant 0 : index
    %4 = vector.load %arg3[%c0_3, %c0_4] : memref<1x256xf32, #tpu.memory_space<vmem>>, vector<1x256xf32>
    %5 = vector.broadcast %4 : vector<1x256xf32> to vector<16x256xf32>
    %6 = arith.addf %3, %5 : vector<16x256xf32>
    %cst_5 = arith.constant 0.000000e+00 : f32
    %7 = vector.broadcast %cst_5 : f32 to vector<16x256xf32>
    %8 = arith.maximumf %6, %7 : vector<16x256xf32>
    %9 = arith.truncf %8 : vector<16x256xf32> to vector<16x256xbf16>
    %c0_6 = arith.constant 0 : index
    %c0_7 = arith.constant 0 : index
    %10 = vector.load %arg4[%c0_6, %c0_7] : memref<256x128xbf16, #tpu.memory_space<vmem>>, vector<256x128xbf16>
    %cst_8 = arith.constant dense<0.000000e+00> : vector<16x128xf32>
    %11 = tpu.matmul %9, %10, %cst_8 {dimension_numbers = #tpu.dot_dimension_numbers<[1], [0], [0], [1], [0, 0, 1, 1], [], []>} : vector<16x256xbf16>, vector<256x128xbf16>, vector<16x128xf32> -> vector<16x128xf32>
    %c0_9 = arith.constant 0 : index
    %c0_10 = arith.constant 0 : index
    %12 = vector.load %arg5[%c0_9, %c0_10] : memref<1x128xf32, #tpu.memory_space<vmem>>, vector<1x128xf32>
    %13 = vector.broadcast %12 : vector<1x128xf32> to vector<16x128xf32>
    %14 = arith.addf %11, %13 : vector<16x128xf32>
    %cst_11 = arith.constant 0.000000e+00 : f32
    %15 = vector.broadcast %cst_11 : f32 to vector<16x128xf32>
    %16 = arith.maximumf %14, %15 : vector<16x128xf32>
    %17 = arith.truncf %16 : vector<16x128xf32> to vector<16x128xbf16>
    %c0_12 = arith.constant 0 : index
    %c0_13 = arith.constant 0 : index
    %18 = vector.load %arg6[%c0_12, %c0_13] : memref<128x128xbf16, #tpu.memory_space<vmem>>, vector<128x128xbf16>
    %cst_14 = arith.constant dense<0.000000e+00> : vector<16x128xf32>
    %19 = tpu.matmul %17, %18, %cst_14 {dimension_numbers = #tpu.dot_dimension_numbers<[1], [0], [0], [1], [0, 0, 1, 1], [], []>} : vector<16x128xbf16>, vector<128x128xbf16>, vector<16x128xf32> -> vector<16x128xf32>
    %c0_15 = arith.constant 0 : index
    %c0_16 = arith.constant 0 : index
    %20 = vector.load %arg7[%c0_15, %c0_16] : memref<1x128xf32, #tpu.memory_space<vmem>>, vector<1x128xf32>
    %21 = vector.broadcast %20 : vector<1x128xf32> to vector<16x128xf32>
    %22 = arith.addf %19, %21 : vector<16x128xf32>
    %cst_17 = arith.constant dense<0xFF800000> : vector<16xf32>
    %23 = vector.multi_reduction <maximumf>, %22, %cst_17 [1] : vector<16x128xf32> to vector<16xf32>
    %24 = vector.shape_cast %23 : vector<16xf32> to vector<16x1xf32>
    %25 = vector.broadcast %24 : vector<16x1xf32> to vector<16x128xf32>
    %26 = arith.subf %22, %25 : vector<16x128xf32>
    %27 = math.exp %26 : vector<16x128xf32>
    %cst_18 = arith.constant dense<0.000000e+00> : vector<16xf32>
    %28 = vector.multi_reduction <add>, %27, %cst_18 [1] : vector<16x128xf32> to vector<16xf32>
    %29 = vector.shape_cast %28 : vector<16xf32> to vector<16x1xf32>
    %30 = math.log %29 : vector<16x1xf32>
    %31 = vector.broadcast %30 : vector<16x1xf32> to vector<16x128xf32>
    %32 = arith.subf %26, %31 : vector<16x128xf32>
    %33 = arith.truncf %32 : vector<16x128xf32> to vector<16x128xbf16>
    %c0_19 = arith.constant 0 : index
    %c0_20 = arith.constant 0 : index
    %34 = vector.load %arg8[%c0_19, %c0_20] : memref<16x128xbf16, #tpu.memory_space<vmem>>, vector<16x128xbf16>
    tpu.vector_store %arg8[%c0_19, %c0_20], %33 {strides = array<i32>} : memref<16x128xbf16, #tpu.memory_space<vmem>>, vector<16x128xbf16>,
    return
  }
  func.func @transform_0(%arg0: i32) -> (i32, i32) {
    %c0_i32 = arith.constant 0 : i32
    %c0_i32_0 = arith.constant 0 : i32
    return %arg0, %c0_i32 : i32, i32
  }
  func.func @transform_1(%arg0: i32) -> (i32, i32) {
    %c0_i32 = arith.constant 0 : i32
    %c0_i32_0 = arith.constant 0 : i32
    %c0_i32_1 = arith.constant 0 : i32
    return %c0_i32, %c0_i32_0 : i32, i32
  }
  func.func @transform_2(%arg0: i32) -> (i32, i32) {
    %c0_i32 = arith.constant 0 : i32
    %c0_i32_0 = arith.constant 0 : i32
    %c0_i32_1 = arith.constant 0 : i32
    return %c0_i32, %c0_i32_0 : i32, i32
  }
  func.func @transform_3(%arg0: i32) -> (i32, i32) {
    %c0_i32 = arith.constant 0 : i32
    %c0_i32_0 = arith.constant 0 : i32
    %c0_i32_1 = arith.constant 0 : i32
    return %c0_i32, %c0_i32_0 : i32, i32
  }
  func.func @transform_4(%arg0: i32) -> (i32, i32) {
    %c0_i32 = arith.constant 0 : i32
    %c0_i32_0 = arith.constant 0 : i32
    %c0_i32_1 = arith.constant 0 : i32
    return %c0_i32, %c0_i32_0 : i32, i32
  }
  func.func @transform_5(%arg0: i32) -> (i32, i32) {
    %c0_i32 = arith.constant 0 : i32
    %c0_i32_0 = arith.constant 0 : i32
    %c0_i32_1 = arith.constant 0 : i32
    return %c0_i32, %c0_i32_0 : i32, i32
  }
  func.func @transform_6(%arg0: i32) -> (i32, i32) {
    %c0_i32 = arith.constant 0 : i32
    %c0_i32_0 = arith.constant 0 : i32
    %c0_i32_1 = arith.constant 0 : i32
    return %c0_i32, %c0_i32_0 : i32, i32
  }
  func.func @transform_7(%arg0: i32) -> (i32, i32) {
    %c0_i32 = arith.constant 0 : i32
    %c0_i32_0 = arith.constant 0 : i32
    return %arg0, %c0_i32 : i32, i32
  }
}

</mosaic_0001>

<bundles_post_ra>
// kernel: tpu_custom_call.1
= control target key start
LH: loop header
LB: loop body
LE: loop exit
PB: predicated region body
PF: predicated region fallthrough
CT: control target
= control target key end

     0   :  { %12 = vsyncpa [#allocation3], 0  ;;  %s912_s0 = inlined_call_operand.hbm [shape: f32[8,32], index: 0, kind: input, shape index: {}]   ;;  %s913_s1 = inlined_call_operand.hbm [shape: bf16[32,256], index: 1, kind: input, shape index: {}]   ;;  %s914_s2 = inlined_call_operand.vmem [shape: f32[1,256], index: 2, kind: input, shape index: {}]   ;;  %s915_s3 = inlined_call_operand.hbm [shape: bf16[256,128], index: 3, kind: input, shape index: {}]   ;;  %s916_s4 = inlined_call_operand.vmem [shape: f32[1,128], index: 4, kind: input, shape index: {}]   ;;  %s917_s5 = inlined_call_operand.hbm [shape: bf16[128,128], index: 5, kind: input, shape index: {}]   ;;  %s918_s6 = inlined_call_operand.vmem [shape: f32[1,128], index: 6, kind: input, shape index: {}]   ;;  %s919_s7 = inlined_call_operand.hbm [shape: bf16[8,128], index: 7, kind: output, shape index: {}]  }
   0x1   :  { %13 = vsyncpa [#allocation6], 0 }
   0x2   :  { %14 = vsyncpa [#allocation9], 0 }
   0x3   :  { %15 = vsyncpa [#allocation4], 0 }
   0x4   :  { %20 = vsyncadd [#allocation3], 128  ;;  %s774_s24 = smov [#allocation5]   ;;  %s775_s26 = smov [#allocation2]  }
   0x5   :  { %s33_s25 = sshll.u32 %s774_s24, 4  ;;  %s21_s27 = sshll.u32 %s775_s26, 4  ;;  %s34_s25 = int_to_ptr.vmem [resolvable:$true] %s33_s25  ;;  %s826_s27 = int_to_ptr.vmem [resolvable:$true] %s21_s27 }
   0x6   :  { %s656_s30 = scalar_lea.hbm %s913_s1, 512 }
   0x7   :  { %p657_p0 = scmp.ne.s32.totalorder %s913_s1, %s656_s30  ;;  %p660_p1 = scmp.lt.u32.totalorder %s656_s30, %s913_s1 }
   0x9   :  { %p662_p2 = pnand %p660_p1, %p657_p0 }
   0xb   :  { %665 = shalt.err (!%p662_p2)
}
   0xc   :  { %s666_s12 = scalar_lea.vmem %s34_s25, 512  ;;  %p671_p4 = scmp.lt.s32.totalorder %s34_s25, %s34_s25 }
   0xd   :  { %p667_p3 = scmp.ne.s32.totalorder %s34_s25, %s666_s12  ;;  %p672_p5 = scmp.lt.s32.totalorder %s666_s12, %s666_s12 }
   0xf   :  { %p673_p6 = por %p672_p5, %p671_p4 }
  0x11   :  { %p674_p7 = pnand %p673_p6, %p667_p3 }
  0x13   :  { %677 = shalt.err (!%p674_p7)
}
  0x14   :  { %s776_s13 = smov 128   ;;  %s777_s14 = smov 8  }
  0x15   :  { %39 = dma.hbm_to_vmem [thread:$0]  %s913_s1, 512, %s34_s25, [#allocation6], %s776_s13, %s776_s13, %s777_s14  }
  0x16   :  { %s678_s19 = scalar_lea.hbm %s912_s0, 128 }
  0x17   :  { %p679_p8 = scmp.ne.s32.totalorder %s912_s0, %s678_s19  ;;  %p682_p9 = scmp.lt.u32.totalorder %s678_s19, %s912_s0 }
  0x19   :  { %p684_p10 = pnand %p682_p9, %p679_p8 }
  0x1b   :  { %687 = shalt.err (!%p684_p10)
}
  0x1c   :  { %s688_s24 = scalar_lea.vmem %s826_s27, 128  ;;  %s692_s1 = scalar_lea.vmem %s826_s27, 256 }
  0x1d   :  { %p689_p11 = scmp.ne.s32.totalorder %s826_s27, %s688_s24  ;;  %p693_p12 = scmp.lt.s32.totalorder %s826_s27, %s826_s27 }
  0x1e   :  { %p694_p13 = scmp.lt.s32.totalorder %s692_s1, %s688_s24 }
  0x20   :  { %p695_p0 = por %p694_p13, %p693_p12 }
  0x22   :  { %p696_p1 = pnand %p695_p0, %p689_p11 }
  0x24   :  { %699 = shalt.err (!%p696_p1)
}
  0x25   :  { %27 = dma.hbm_to_vmem [thread:$0]  %s912_s0, 128, %s826_s27, [#allocation3], %s776_s13, %s776_s13, %s777_s14  }
  0x26   :  { %s778_s28 = smov [#allocation7]   ;;  %s700_s9 = scalar_lea.hbm %s915_s3, 2048 }
  0x27   :  { %s47_s29 = sshll.u32 %s778_s28, 4  ;;  %p701_p2 = scmp.ne.s32.totalorder %s915_s3, %s700_s9  ;;  %s48_s29 = int_to_ptr.vmem [resolvable:$true] %s47_s29 }
  0x28   :  { %p704_p3 = scmp.lt.u32.totalorder %s700_s9, %s915_s3 }
  0x2a   :  { %p706_p4 = pnand %p704_p3, %p701_p2 }
  0x2c   :  { %709 = shalt.err (!%p706_p4)
}
  0x2d   :  { %s710_s16 = scalar_lea.vmem %s48_s29, 2048  ;;  %p715_p6 = scmp.lt.s32.totalorder %s48_s29, %s48_s29 }
  0x2e   :  { %p711_p5 = scmp.ne.s32.totalorder %s48_s29, %s710_s16  ;;  %p716_p7 = scmp.lt.s32.totalorder %s710_s16, %s710_s16 }
  0x30   :  { %p717_p8 = por %p716_p7, %p715_p6 }
  0x32   :  { %p718_p9 = pnand %p717_p8, %p711_p5 }
  0x34   :  { %721 = shalt.err (!%p718_p9)
}
  0x35   :  { %s779_s0 = smov 64   ;;  %s780_s27 = smov 4  }
  0x36   :  { %53 = dma.hbm_to_vmem [thread:$0]  %s915_s3, 2048, %s48_s29, [#allocation6], %s779_s0, %s779_s0, %s780_s27  }
  0x37   :  { %s781_s17 = smov [#allocation8]   ;;  %s722_s21 = scalar_lea.hbm %s917_s5, 1024 }
  0x38   :  { %s61_s18 = sshll.u32 %s781_s17, 4  ;;  %p723_p10 = scmp.ne.s32.totalorder %s917_s5, %s722_s21  ;;  %s62_s18 = int_to_ptr.vmem [resolvable:$true] %s61_s18 }
  0x39   :  { %p726_p11 = scmp.lt.u32.totalorder %s722_s21, %s917_s5 }
  0x3b   :  { %p728_p12 = pnand %p726_p11, %p723_p10 }
  0x3d   :  { %731 = shalt.err (!%p728_p12)
}
  0x3e   :  { %s732_s25 = scalar_lea.vmem %s62_s18, 1024  ;;  %p737_p0 = scmp.lt.s32.totalorder %s62_s18, %s62_s18 }
  0x3f   :  { %p733_p13 = scmp.ne.s32.totalorder %s62_s18, %s732_s25  ;;  %p738_p1 = scmp.lt.s32.totalorder %s732_s25, %s732_s25 }
  0x41   :  { %p739_p2 = por %p738_p1, %p737_p0 }
  0x43   :  { %p740_p3 = pnand %p739_p2, %p733_p13 }
  0x45   :  { %743 = shalt.err (!%p740_p3)
}
  0x46   :  { %67 = dma.hbm_to_vmem [thread:$0]  %s917_s5, 1024, %s62_s18, [#allocation9], %s779_s0, %s779_s0, %s780_s27  }
  0x47   :  { %766 = dma.done.wait [#allocation3], 256  }
  0x48   :  { %767 = vsyncadd [#allocation3], 4294967040 }
  0x49   :  { %768 = dma.done.wait [#allocation6], 2560  }
  0x4a   :  { %769 = vsyncadd [#allocation6], 4294964736 }
  0x4b   :  { %770 = dma.done.wait [#allocation9], 1024  }
  0x4c   :  { %771 = vsyncadd [#allocation9], 4294966272  ;;  %v782_v0 = vmov 0   ;;  %v618_v1 = vld [vmem:[#allocation5 + $0x4] ss:$8 sps:$4 sm:$0xff]   ;;  %v83_v5 = vld [vmem:[#allocation2] sm:$0xff]  ;;  %v92_v30 = vlaneseq }
  0x4d   :  { %158 = vmatprep.mubr.bf16.mxu0 %v782_v0  ;;  %v620_v2 = vld [vmem:[#allocation5] ss:$8 sps:$4 sm:$0xff]   ;;  %126 = vmatprep.subr.bf16.mxu0 %v618_v1  ;;  %v621_v3 = vld [vmem:[#allocation5 + $0x14] ss:$8 sps:$4 sm:$0xff]   ;;  %v623_v4 = vld [vmem:[#allocation5 + $0x10] ss:$8 sps:$4 sm:$0xff]  }
  0x4e   :  { %127 = vmatpush1.bf16.msra.mxu0 %v620_v2  ;;  %v84_v6 = vld [vmem:[#allocation2 + $0x8] sm:$0xff]  ;;  %v624_v7 = vld [vmem:[#allocation7 + $0x40] sm:$0xff]   ;;  %v626_v10 = vld [vmem:[#allocation7 + $0x48] sm:$0xff]   ;;  %vm122_vm0 = vcmask 261120   ;;  %v783_v25 = vmov 0.0   ;;  %v93_v31 = vshrl.u32 %v92_v30, 7 }
  0x4f   :  { %128 = vmatprep.subr.bf16.mxu0 %v621_v3  ;;  %v625_v8 = vld [vmem:[#allocation7] sm:$0xff]   ;;  %v85_v9 = vpack.c.bf16 %v84_v6, %v83_v5  ;;  %555 = vmatprep.subr.bf16.mxu1 %v624_v7  ;;  %v627_v11 = vld [vmem:[#allocation7 + $0x8] sm:$0xff]   ;;  %v628_v12 = vld [vmem:[#allocation7 + $0x50] sm:$0xff]   ;;  %vm784_vm1 = vmmov 0  }
  0x50   :  { %556 = vmatpush3.bf16.msra.mxu1 %v625_v8  ;;  %v629_v13 = vld [vmem:[#allocation7 + $0x10] sm:$0xff]   ;;  %v630_v14 = vld [vmem:[#allocation7 + $0x58] sm:$0xff]   ;;  %v632_v16 = vld [vmem:[#allocation7 + $0x60] sm:$0xff]   ;;  %v94_v32 = vsub.s32 0, %v93_v31  ;;  %v98_v34 = vsub.s32 1, %v93_v31 }
  0x51   :  { %557 = vmatprep.subr.bf16.mxu1 %v626_v10  ;;  %v631_v15 = vld [vmem:[#allocation7 + $0x18] sm:$0xff]   ;;  %v633_v17 = vld [vmem:[#allocation7 + $0x20] sm:$0xff]   ;;  %v634_v18 = vld [vmem:[#allocation7 + $0x68] sm:$0xff]  }
  0x52   :  { %129 = vmatpush1.bf16.msra.mxu0 %v623_v4  ;;  %v635_v19 = vld [vmem:[#allocation7 + $0x28] sm:$0xff]   ;;  %v636_v20 = vld [vmem:[#allocation7 + $0x70] sm:$0xff]   ;;  %v638_v22 = vld [vmem:[#allocation7 + $0x78] sm:$0xff]  }
  0x53   :  { %v637_v21 = vld [vmem:[#allocation7 + $0x30] sm:$0xff]   ;;  %v639_v23 = vld [vmem:[#allocation7 + $0x38] sm:$0xff]   ;;  %v640_v24 = vld [vmem:[#allocation8] sm:$0xff]   ;;  %586 = vmatprep.subr.bf16.mxu0 %v783_v25 }
  0x54   :  { %558 = vmatpush3.bf16.msra.mxu1 %v627_v11  ;;  %v641_v26 = vld [vmem:[#allocation8 + $0x8] sm:$0xff]   ;;  %v642_v27 = vld [vmem:[#allocation8 + $0x10] sm:$0xff]   ;;  %v643_v28 = vld [vmem:[#allocation8 + $0x18] sm:$0xff]  }
  0x55   :  { %519 = vmatmul.mubr.msk.bf16.vlgmr.msra.gmra.mrb[0].mxu0 %vm122_vm0, %v85_v9  ;;  %559 = vmatprep.subr.bf16.mxu1 %v628_v12  ;;  %v644_v29 = vld [vmem:[#allocation8 + $0x20] sm:$0xff]   ;;  %v90_v33 = vld [vmem:[%s914_s2] sm:$0x3]  ;;  %v645_v51 = vld [vmem:[#allocation8 + $0x28] sm:$0xff]  }
  0x56   :  { %587 = vmatpush3.bf16.msra.mxu0 %v640_v24  ;;  %v95_v35 = vrot.slane %v90_v33, %v94_v32  ;;  %v99_v36 = vrot.slane %v90_v33, %v98_v34  ;;  %v646_v52 = vld [vmem:[#allocation8 + $0x30] sm:$0xff]   ;;  %v647_v53 = vld [vmem:[#allocation8 + $0x38] sm:$0xff]   ;;  %602 = vmatprep.mubr.msk.bf16.mxu0 %vm784_vm1, %v783_v25 }
  0x57   :  { %588 = vmatprep.subr.bf16.mxu0 %v783_v25  ;;  %v520_v55 = vld [vmem:[%s916_s4] ss:$0 sm:$0xff] }
  0x58   :  { %560 = vmatpush3.bf16.msra.mxu1 %v629_v13  ;;  %v537_v2 = vld [vmem:[%s918_s6] ss:$0 sm:$0xff] }
  0x59   :  { %561 = vmatprep.subr.bf16.mxu1 %v630_v14 }
  0x5a   :  { %589 = vmatpush3.bf16.msra.mxu0 %v641_v26 }
  0x5b   :  { %590 = vmatprep.subr.bf16.mxu0 %v783_v25 }
  0x5c   :  { %562 = vmatpush3.bf16.msra.mxu1 %v631_v15 }
  0x5d   :  { %563 = vmatprep.subr.bf16.mxu1 %v632_v16 }
  0x5e   :  { %591 = vmatpush3.bf16.msra.mxu0 %v642_v27 }
  0x5f   :  { %592 = vmatprep.subr.bf16.mxu0 %v783_v25 }
  0x60   :  { %564 = vmatpush3.bf16.msra.mxu1 %v633_v17 }
  0x61   :  { %565 = vmatprep.subr.bf16.mxu1 %v634_v18 }
  0x62   :  { %593 = vmatpush3.bf16.msra.mxu0 %v643_v28 }
  0x63   :  { %594 = vmatprep.subr.bf16.mxu0 %v783_v25 }
  0x64   :  { %566 = vmatpush3.bf16.msra.mxu1 %v635_v19 }
  0x65   :  { %567 = vmatprep.subr.bf16.mxu1 %v636_v20 }
  0x66   :  { %595 = vmatpush3.bf16.msra.mxu0 %v644_v29 }
  0x67   :  { %596 = vmatprep.subr.bf16.mxu0 %v783_v25 }
  0x68   :  { %568 = vmatpush3.bf16.msra.mxu1 %v637_v21 }
  0x69   :  { %569 = vmatprep.subr.bf16.mxu1 %v638_v22 }
  0x6a   :  { %597 = vmatpush3.bf16.msra.mxu0 %v645_v51 }
  0x6b   :  { %598 = vmatprep.subr.bf16.mxu0 %v783_v25 }
  0x6c   :  { %570 = vmatpush3.bf16.msra.mxu1 %v639_v23 }
  0x6e   :  { %599 = vmatpush3.bf16.msra.mxu0 %v646_v52 }
  0x6f   :  { %600 = vmatprep.subr.bf16.mxu0 %v783_v25 }
  0x72   :  { %601 = vmatpush3.bf16.msra.mxu0 %v647_v53 }
 0x128   :  { %v160_v37 = vpop.f32.mrb[0].mxu0 }
 0x129   :  { %v161_v38 = vadd.f32 %v160_v37, %v95_v35  ;;  %v162_v39 = vpop.f32.mrb[1].mxu0 }
 0x12a   :  { %v163_v40 = vadd.f32 %v162_v39, %v99_v36  ;;  %v164_v41 = vpop.f32.mrb[2].mxu0 }
 0x12b   :  { %v165_v42 = vadd.f32 %v164_v41, %v95_v35  ;;  %v166_v43 = vpop.f32.mrb[3].mxu0  ;;  %v169_v45 = vmax.f32 %v161_v38, 0.0 }
 0x12c   :  { %v167_v44 = vadd.f32 %v166_v43, %v99_v36  ;;  %v170_v47 = vmax.f32 %v163_v40, 0.0 }
 0x12d   :  { %v171_v46 = vmax.f32 %v165_v42, 0.0 }
 0x12e   :  { %v172_v48 = vmax.f32 %v167_v44, 0.0 }
 0x12f   :  { %v173_v49 = vpack.c.bf16 %v171_v46, %v169_v45 }
 0x130   :  { %v174_v50 = vpack.c.bf16 %v172_v48, %v170_v47 }
 0x132   :  { %342 = vmatprep.mubr.bf16.mxu1 %v174_v50 }
 0x133   :  { %343 = vmatmul.mubr.bf16.vlgmr.msra.gmra.mrb[0].mxu1 %v173_v49 }
 0x206   :  { %v571_v54 = vpop.f32.mrb[0].mxu1 }
 0x207   :  { %v572_v56 = vpop.f32.mrb[1].mxu1 }
 0x208   :  { %v573_v57 = vadd.f32 %v572_v56, %v571_v54  ;;  %v574_v58 = vpop.f32.mrb[2].mxu1 }
 0x209   :  { %v575_v59 = vpop.f32.mrb[3].mxu1 }
 0x20a   :  { %v345_v60 = vadd.f32 %v573_v57, %v520_v55  ;;  %v576_v61 = vadd.f32 %v575_v59, %v574_v58 }
 0x20c   :  { %v348_v62 = vadd.f32 %v576_v61, %v520_v55  ;;  %v351_v63 = vmax.f32 %v345_v60, 0.0 }
 0x20e   :  { %v352_v0 = vmax.f32 %v348_v62, 0.0 }
 0x210   :  { %v353_v1 = vpack.c.bf16 %v352_v0, %v351_v63 }
 0x212   :  { %603 = vmatmul.mubr.bf16.vlgmr.msra.gmra.mrb[4].mxu0 %v353_v1 }
 0x2e5   :  { %v459_v3 = vpop.f32.mrb[4].mxu0 }
 0x2e6   :  { %v460_v4 = vadd.f32 %v537_v2, %v459_v3  ;;  %v604_v5 = vpop.f32.mrb[5].mxu0 }
 0x2e7   :  { %v462_v6 = vpop.f32.mrb[6].mxu0 }
 0x2e8   :  { %466 = vmax.xlane.f32.xlu0 %v460_v4  ;;  %v605_v7 = vpop.f32.mrb[7].mxu0  ;;  %v463_v8 = vadd.f32 %v537_v2, %v462_v6 }
 0x2ec   :  { %468 = vmax.xlane.f32.xlu0 %v463_v8 }
 0x375   :  { %v467_v9 = vpop.xlane.xlu0 %466 }
 0x376   :  { %v470_v10 = vsub.f32 %v460_v4, %v467_v9 }
 0x378   :  { %v472_v11 = vmul.f32 1.442695, %v470_v10 }
 0x379   :  { %v469_v12 = vpop.xlane.xlu0 %468 }
 0x37a   :  { %v471_v13 = vsub.f32 %v463_v8, %v469_v12  ;;  %648 = vpow2.f32 %v472_v11 }
 0x37c   :  { %v474_v14 = vmul.f32 1.442695, %v471_v13 }
 0x37e   :  { %650 = vpow2.f32 %v474_v14 }
 0x384   :  { %v649_v15 = vpop.eup %648 }
 0x385   :  { %476 = vadd.xlane.f32.xlu1 %v649_v15 }
 0x388   :  { %v651_v16 = vpop.eup %650 }
 0x389   :  { %478 = vadd.xlane.f32.xlu1 %v651_v16 }
 0x412   :  { %v477_v17 = vpop.xlane.xlu1 %476 }
 0x413   :  { %652 = vlog2.f32 %v477_v17 }
 0x416   :  { %v479_v18 = vpop.xlane.xlu1 %478 }
 0x417   :  { %654 = vlog2.f32 %v479_v18 }
 0x41d   :  { %v653_v19 = vpop.eup %652 }
 0x41e   :  { %v481_v20 = vmul.f32 0.6931472, %v653_v19 }
 0x420   :  { %v484_v23 = vsub.f32 %v470_v10, %v481_v20 }
 0x421   :  { %v655_v21 = vpop.eup %654 }
 0x422   :  { %v483_v22 = vmul.f32 0.6931472, %v655_v21 }
 0x424   :  { %v485_v24 = vsub.f32 %v471_v13, %v483_v22 }
 0x426   :  { %v553_v25 = vpack.c.bf16 %v485_v24, %v484_v23 }
 0x428   :  { %554 = vst [vmem:[#allocation10] sm:$0xff] %v553_v25  }
 0x429   :  { %500 = vsyncadd [#allocation4], 64  ;;  %s785_s4 = smov [#allocation10]  }
 0x42a   :  { %s501_s6 = sshll.u32 %s785_s4, 4  ;;  %s502_s6 = int_to_ptr.vmem [resolvable:$true] %s501_s6 }
 0x42b   :  { %s744_s9 = scalar_lea.vmem %s502_s6, 64  ;;  %s748_s10 = scalar_lea.vmem %s502_s6, 128 }
 0x42c   :  { %p745_p4 = scmp.ne.s32.totalorder %s502_s6, %s744_s9  ;;  %p749_p5 = scmp.lt.s32.totalorder %s502_s6, %s502_s6 }
 0x42d   :  { %p750_p6 = scmp.lt.s32.totalorder %s748_s10, %s744_s9 }
 0x42f   :  { %p751_p7 = por %p750_p6, %p749_p5 }
 0x431   :  { %p752_p8 = pnand %p751_p7, %p745_p4 }
 0x433   :  { %755 = shalt.err (!%p752_p8)
}
 0x434   :  { %s756_s15 = scalar_lea.hbm %s919_s7, 64 }
 0x435   :  { %p757_p9 = scmp.ne.s32.totalorder %s919_s7, %s756_s15  ;;  %p760_p10 = scmp.lt.u32.totalorder %s756_s15, %s919_s7 }
 0x437   :  { %p762_p11 = pnand %p760_p10, %p757_p9 }
 0x439   :  { %765 = shalt.err (!%p762_p11)
}
 0x43a   :  { %507 = dma.vmem_to_hbm [thread:$0]  %s502_s6, 64, %s919_s7, [#allocation4], %s779_s0, %s779_s0, %s780_s27  }
 0x43b   :  { %772 = dma.done.wait [#allocation4], 128  }
 0x43c   :  { %773 = vsyncadd [#allocation4], 4294967168 }
 0x43d   :  { %511 = vsyncpa [#allocation3], 1 }
 0x43e   :  { %512 = vsyncpa [#allocation6], 1 }
 0x43f   :  { %513 = vsyncpa [#allocation9], 1 }
 0x440   :  { %514 = vsyncpa [#allocation4], 1 }

</bundles_post_ra>
